<compile_context>
chip_gen: v7x
topology: tpu7x:2x2x1
jax: 0.10.0
libtpu: 0.0.40
codegen_flags: <defaults>
</compile_context>

<pallas_src>
import jax
import jax.numpy as jnp
import numpy as np
from jax import lax
from jax.experimental import pallas as pl
from jax.experimental.pallas import tpu as pltpu


def _make_kernel(n_layers, T, N, F, H):
    """Builds the Pallas kernel body for a given static configuration."""
    unroll = T <= 8

    def kernel(*refs):
        # inputs: x_flat, then per layer (w_ih_cat, w_hh_cat, b_cat), w_out_row, b_out
        x_ref = refs[0]                                   # (T*N, F)
        idx = 1
        layers = []
        for _ in range(n_layers):
            layers.append((refs[idx], refs[idx + 1], refs[idx + 2]))
            idx += 3
        w_out_ref = refs[idx]                             # (1, H)
        b_out_ref = refs[idx + 1]                         # (1, 1)
        y_ref = refs[idx + 2]                             # output (1, T)
        seq_ref = refs[idx + 3]                           # VMEM (T*N, H)
        g_ref = refs[idx + 4]                             # VMEM (T*N, 4H)

        h_fin = None
        for l in range(n_layers):
            w_ih_ref, w_hh_ref, b_ref = layers[l]         # (in,4H), (H,4H), (1,4H)

            # Hoisted input projection: one (T*N, in) @ (in, 4H) matmul + bias.
            x_in = x_ref[...] if l == 0 else seq_ref[...]
            g_ref[...] = (
                jnp.dot(x_in, w_ih_ref[...], preferred_element_type=jnp.float32)
                + b_ref[...]
            )

            w_hh = w_hh_ref[...]                          # hoist recurrent weight load
            last_layer = l == n_layers - 1
            skip_seq_store = last_layer and (T <= N)

            def step(t, carry, w_hh=w_hh, skip=skip_seq_store):
                h, c = carry
                start = pl.multiple_of(t * N, N)
                # One recurrent matmul per step: (N, H) @ (H, 4H).
                z = g_ref[pl.ds(start, N), :] + jnp.dot(
                    h, w_hh, preferred_element_type=jnp.float32
                )
                # Gate order in the packed 4H axis: [i, f, o, g].
                sig = jax.nn.sigmoid(z[:, : 3 * H])       # one EUP stream for i,f,o
                i_g = sig[:, :H]
                f_g = sig[:, H : 2 * H]
                o_g = sig[:, 2 * H : 3 * H]
                g_g = jnp.tanh(z[:, 3 * H :])
                c = f_g * c + i_g * g_g
                h = o_g * jnp.tanh(c)
                if not skip:
                    seq_ref[pl.ds(start, N), :] = h       # immediate store
                return (h, c)

            h0 = jnp.zeros((N, H), jnp.float32)
            c0 = jnp.zeros((N, H), jnp.float32)
            h_fin, _ = lax.fori_loop(0, T, step, (h0, c0), unroll=unroll)

        # Reproduce  lstm_out.view(seq_len, B, H)[-1]  ==  last T rows of the
        # row-major flat (T*N, H) buffer.
        if T <= N:
            # All needed rows come from the final timestep's h (never stored).
            last = h_fin[N - T :, :]                      # (T, H)
        else:
            last = seq_ref[pl.ds(T * N - T, T), :]        # (T, H)

        # Final (H -> 1) projection on the VPU/XLU (multiply + lane reduce),
        # written as a lane-dense (1, T) row.
        y = jnp.sum(last * w_out_ref[...], axis=-1)[None, :] + b_out_ref[...]
        y_ref[...] = y

    return kernel


def _full_spec(a):
    # whole-array block, single grid point
    return pl.BlockSpec(a.shape, lambda i, nd=a.ndim: (0,) * nd)


def covid_predictor_forward(sequences, params, n_hidden, seq_len, n_layers):
    """Equivalent of CovidPredictor.forward after reset_hidden_state()."""
    B = sequences.shape[0]
    # sequences.view(len(sequences), seq_len, -1)
    x = sequences.reshape(B, seq_len, -1).astype(jnp.float32)
    T, N, F = x.shape          # T = B (LSTM time axis), N = seq_len (LSTM batch)
    H = n_hidden
    x_flat = x.reshape(T * N, F)   # row-major: row t*N + n == x[t, n]

    inputs = [x_flat]
    in_specs = [_full_spec(x_flat)]
    for (w_ih, w_hh, b) in params["layers"]:
        inputs += [w_ih, w_hh, b]
        in_specs += [_full_spec(w_ih), _full_spec(w_hh), _full_spec(b)]
    inputs += [params["w_out_row"], params["b_out"]]
    in_specs += [_full_spec(params["w_out_row"]), _full_spec(params["b_out"])]

    kernel = _make_kernel(n_layers, T, N, F, H)
    # TODO(synk): for large N on v7x, shard the LSTM batch (N) over a "parallel"
    # grid axis so both TensorCores are used; grid=(1,) is fine at these sizes.
    y = pl.pallas_call(
        kernel,
        grid=(1,),
        in_specs=in_specs,
        out_specs=pl.BlockSpec((1, T), lambda i: (0, 0)),
        out_shape=jax.ShapeDtypeStruct((1, T), jnp.float32),
        scratch_shapes=[
            pltpu.VMEM((T * N, H), jnp.float32),        # layer output sequence
            pltpu.VMEM((T * N, 4 * H), jnp.float32),    # precomputed gate slab
        ],
        compiler_params=pltpu.CompilerParams(
            dimension_semantics=("arbitrary",)),
    )(*inputs)
    return y.reshape(T, 1)


def init_params(key, n_features, n_hidden, n_layers):
    """Deterministic synthetic parameters, PyTorch-style uniform(-1/sqrt(H), 1/sqrt(H)).

    Returns both raw PyTorch-layout weights (for the reference) and the packed
    kernel layout: per gate concat (in_dim, 4H)/(H, 4H)/(1, 4H) with gate order
    [i, f, o, g] so the three sigmoid gates are contiguous.
    """
    H = n_hidden
    k = 1.0 / np.sqrt(H)
    order = jnp.array([0, 1, 3, 2])   # PyTorch [i,f,g,o] -> packed [i,f,o,g]
    packed_layers, raw_layers = [], []
    for l in range(n_layers):
        in_dim = n_features if l == 0 else H
        key, k1, k2, k3, k4 = jax.random.split(key, 5)
        w_ih = jax.random.uniform(k1, (4 * H, in_dim), jnp.float32, -k, k)
        w_hh = jax.random.uniform(k2, (4 * H, H), jnp.float32, -k, k)
        b_ih = jax.random.uniform(k3, (4 * H,), jnp.float32, -k, k)
        b_hh = jax.random.uniform(k4, (4 * H,), jnp.float32, -k, k)
        raw_layers.append((w_ih, w_hh, b_ih, b_hh))

        w_ih_cat = jnp.transpose(
            w_ih.reshape(4, H, in_dim)[order], (2, 0, 1)).reshape(in_dim, 4 * H)
        w_hh_cat = jnp.transpose(
            w_hh.reshape(4, H, H)[order], (2, 0, 1)).reshape(H, 4 * H)
        b_cat = (b_ih + b_hh).reshape(4, H)[order].reshape(1, 4 * H)
        packed_layers.append((w_ih_cat, w_hh_cat, b_cat))

    key, k5, k6 = jax.random.split(key, 3)
    w_lin = jax.random.uniform(k5, (1, H), jnp.float32, -k, k)
    b_lin = jax.random.uniform(k6, (1,), jnp.float32, -k, k)
    return {
        "layers": packed_layers,
        "raw_layers": raw_layers,
        "w_out_row": w_lin,                 # (1, H) — broadcast row for VPU reduce
        "b_out": b_lin.reshape(1, 1),
        "w_lin": w_lin,
        "b_lin": b_lin,
    }


def reference_forward(sequences, params, n_hidden, seq_len, n_layers):
    """Pure-JAX reference using the RAW PyTorch-layout weights (gate order i,f,g,o)."""
    B = sequences.shape[0]
    x = sequences.reshape(B, seq_len, -1).astype(jnp.float32)
    T, N, _ = x.shape
    H = n_hidden
    seq = x
    for l in range(n_layers):
        w_ih, w_hh, b_ih, b_hh = params["raw_layers"][l]
        h = jnp.zeros((N, H), jnp.float32)
        c = jnp.zeros((N, H), jnp.float32)
        outs = []
        for t in range(T):
            gates = seq[t] @ w_ih.T + h @ w_hh.T + b_ih + b_hh
            i_g = jax.nn.sigmoid(gates[:, 0:H])
            f_g = jax.nn.sigmoid(gates[:, H:2 * H])
            g_g = jnp.tanh(gates[:, 2 * H:3 * H])
            o_g = jax.nn.sigmoid(gates[:, 3 * H:4 * H])
            c = f_g * c + i_g * g_g
            h = o_g * jnp.tanh(c)
            outs.append(h)
        seq = jnp.stack(outs, axis=0)
    flat = seq.reshape(T * N, H)
    last = flat[T * N - T:]                 # == view(seq_len, B, H)[-1]
    return last @ params["w_lin"].T + params["b_lin"]


if __name__ == "__main__":
    # small shapes consistent with the module
    n_features, n_hidden, seq_len, n_layers = 4, 32, 8, 2
    batch = 2

    key = jax.random.PRNGKey(0)
    key, pkey, xkey = jax.random.split(key, 3)
    params = init_params(pkey, n_features, n_hidden, n_layers)
    sequences = jax.random.normal(xkey, (batch, seq_len, n_features), jnp.float32)

    y = covid_predictor_forward(sequences, params, n_hidden, seq_len, n_layers)
    y = jax.block_until_ready(y)

    y_ref = reference_forward(sequences, params, n_hidden, seq_len, n_layers)
    assert y.shape == (batch, 1)
    assert np.allclose(np.asarray(y), np.asarray(y_ref), atol=1e-4, rtol=1e-4), (y, y_ref)
    print("KERNEL_OK")
</pallas_src>

<mosaic_0001>
module attributes {stable_mosaic.version = 11 : i64} {
  func.func @kernel(%arg0: i32, %arg1: memref<16x4xf32, #tpu.memory_space<vmem>>, %arg2: memref<4x128xf32, #tpu.memory_space<vmem>>, %arg3: memref<32x128xf32, #tpu.memory_space<vmem>>, %arg4: memref<1x128xf32, #tpu.memory_space<vmem>>, %arg5: memref<32x128xf32, #tpu.memory_space<vmem>>, %arg6: memref<32x128xf32, #tpu.memory_space<vmem>>, %arg7: memref<1x128xf32, #tpu.memory_space<vmem>>, %arg8: memref<1x32xf32, #tpu.memory_space<vmem>>, %arg9: memref<1x1xf32, #tpu.memory_space<vmem>>, %arg10: memref<1x2xf32, #tpu.memory_space<vmem>>, %arg11: memref<16x32xf32, #tpu.memory_space<vmem>>, %arg12: memref<16x128xf32, #tpu.memory_space<vmem>>) attributes {dimension_semantics = [#tpu.dimension_semantics<arbitrary>], iteration_bounds = array<i64: 1>, scalar_prefetch = 0 : i64, scratch_operands = 2 : i64, tpu.core_type = #tpu.core_type<tc>, window_params = [{pipeline_mode = #tpu.pipeline_mode<synchronous>, transform_indices = @transform_0, window_bounds = array<i64: 16, 4>}, {pipeline_mode = #tpu.pipeline_mode<synchronous>, transform_indices = @transform_1, window_bounds = array<i64: 4, 128>}, {pipeline_mode = #tpu.pipeline_mode<synchronous>, transform_indices = @transform_2, window_bounds = array<i64: 32, 128>}, {pipeline_mode = #tpu.pipeline_mode<synchronous>, transform_indices = @transform_3, window_bounds = array<i64: 1, 128>}, {pipeline_mode = #tpu.pipeline_mode<synchronous>, transform_indices = @transform_4, window_bounds = array<i64: 32, 128>}, {pipeline_mode = #tpu.pipeline_mode<synchronous>, transform_indices = @transform_5, window_bounds = array<i64: 32, 128>}, {pipeline_mode = #tpu.pipeline_mode<synchronous>, transform_indices = @transform_6, window_bounds = array<i64: 1, 128>}, {pipeline_mode = #tpu.pipeline_mode<synchronous>, transform_indices = @transform_7, window_bounds = array<i64: 1, 32>}, {pipeline_mode = #tpu.pipeline_mode<synchronous>, transform_indices = @transform_8, window_bounds = array<i64: 1, 1>}, {pipeline_mode = #tpu.pipeline_mode<synchronous>, transform_indices = @transform_9, window_bounds = array<i64: 1, 2>}]} {
    %c0 = arith.constant 0 : index
    %c0_0 = arith.constant 0 : index
    %0 = vector.load %arg1[%c0, %c0_0] : memref<16x4xf32, #tpu.memory_space<vmem>>, vector<16x4xf32>
    %c0_1 = arith.constant 0 : index
    %c0_2 = arith.constant 0 : index
    %1 = vector.load %arg2[%c0_1, %c0_2] : memref<4x128xf32, #tpu.memory_space<vmem>>, vector<4x128xf32>
    %cst = arith.constant dense<0.000000e+00> : vector<16x128xf32>
    %2 = tpu.matmul %0, %1, %cst {dimension_numbers = #tpu.dot_dimension_numbers<[1], [0], [0], [1], [0, 0, 1, 1], [], []>} : vector<16x4xf32>, vector<4x128xf32>, vector<16x128xf32> -> vector<16x128xf32>
    %c0_3 = arith.constant 0 : index
    %c0_4 = arith.constant 0 : index
    %3 = vector.load %arg4[%c0_3, %c0_4] : memref<1x128xf32, #tpu.memory_space<vmem>>, vector<1x128xf32>
    %4 = vector.broadcast %3 : vector<1x128xf32> to vector<16x128xf32>
    %5 = arith.addf %2, %4 : vector<16x128xf32>
    %c0_5 = arith.constant 0 : index
    %c0_6 = arith.constant 0 : index
    %6 = vector.load %arg12[%c0_5, %c0_6] : memref<16x128xf32, #tpu.memory_space<vmem>>, vector<16x128xf32>
    tpu.vector_store %arg12[%c0_5, %c0_6], %5 {strides = array<i32>} : memref<16x128xf32, #tpu.memory_space<vmem>>, vector<16x128xf32>,
    %c0_7 = arith.constant 0 : index
    %c0_8 = arith.constant 0 : index
    %7 = vector.load %arg3[%c0_7, %c0_8] : memref<32x128xf32, #tpu.memory_space<vmem>>, vector<32x128xf32>
    %cst_9 = arith.constant 0.000000e+00 : f32
    %8 = vector.broadcast %cst_9 : f32 to vector<8x32xf32>
    %cst_10 = arith.constant 0.000000e+00 : f32
    %9 = vector.broadcast %cst_10 : f32 to vector<8x32xf32>
    %c0_i32 = arith.constant 0 : i32
    %c8_i32 = arith.constant 8 : i32
    %10 = arith.muli %c0_i32, %c8_i32 : i32
    %11 = tpu.assume_multiple %10, 8 : i32
    %12 = arith.index_cast %11 : i32 to index
    %c0_11 = arith.constant 0 : index
    %13 = vector.load %arg12[%12, %c0_11] : memref<16x128xf32, #tpu.memory_space<vmem>>, vector<8x128xf32>
    %cst_12 = arith.constant dense<0.000000e+00> : vector<8x128xf32>
    %14 = tpu.matmul %8, %7, %cst_12 {dimension_numbers = #tpu.dot_dimension_numbers<[1], [0], [0], [1], [0, 0, 1, 1], [], []>} : vector<8x32xf32>, vector<32x128xf32>, vector<8x128xf32> -> vector<8x128xf32>
    %15 = arith.addf %13, %14 : vector<8x128xf32>
    %16 = vector.extract_strided_slice %15 {offsets = [0, 0], sizes = [8, 96], strides = [1, 1]} : vector<8x128xf32> to vector<8x96xf32>
    %17 = arith.negf %16 : vector<8x96xf32>
    %18 = math.exp %17 : vector<8x96xf32>
    %cst_13 = arith.constant 1.000000e+00 : f32
    %19 = vector.broadcast %cst_13 : f32 to vector<8x96xf32>
    %20 = arith.addf %19, %18 : vector<8x96xf32>
    %21 = arith.divf %19, %20 : vector<8x96xf32>
    %22 = vector.extract_strided_slice %21 {offsets = [0, 0], sizes = [8, 32], strides = [1, 1]} : vector<8x96xf32> to vector<8x32xf32>
    %23 = vector.extract_strided_slice %21 {offsets = [0, 32], sizes = [8, 32], strides = [1, 1]} : vector<8x96xf32> to vector<8x32xf32>
    %24 = vector.extract_strided_slice %21 {offsets = [0, 64], sizes = [8, 32], strides = [1, 1]} : vector<8x96xf32> to vector<8x32xf32>
    %25 = vector.extract_strided_slice %15 {offsets = [0, 96], sizes = [8, 32], strides = [1, 1]} : vector<8x128xf32> to vector<8x32xf32>
    %26 = math.tanh %25 : vector<8x32xf32>
    %27 = arith.mulf %23, %9 : vector<8x32xf32>
    %28 = arith.mulf %22, %26 : vector<8x32xf32>
    %29 = arith.addf %27, %28 : vector<8x32xf32>
    %30 = math.tanh %29 : vector<8x32xf32>
    %31 = arith.mulf %24, %30 : vector<8x32xf32>
    %32 = arith.index_cast %11 : i32 to index
    %c0_14 = arith.constant 0 : index
    %33 = vector.load %arg11[%32, %c0_14] : memref<16x32xf32, #tpu.memory_space<vmem>>, vector<8x32xf32>
    tpu.vector_store %arg11[%32, %c0_14], %31 {strides = array<i32>} : memref<16x32xf32, #tpu.memory_space<vmem>>, vector<8x32xf32>,
    %c1_i32 = arith.constant 1 : i32
    %c8_i32_15 = arith.constant 8 : i32
    %34 = arith.muli %c1_i32, %c8_i32_15 : i32
    %35 = tpu.assume_multiple %34, 8 : i32
    %36 = arith.index_cast %35 : i32 to index
    %c0_16 = arith.constant 0 : index
    %37 = vector.load %arg12[%36, %c0_16] : memref<16x128xf32, #tpu.memory_space<vmem>>, vector<8x128xf32>
    %cst_17 = arith.constant dense<0.000000e+00> : vector<8x128xf32>
    %38 = tpu.matmul %31, %7, %cst_17 {dimension_numbers = #tpu.dot_dimension_numbers<[1], [0], [0], [1], [0, 0, 1, 1], [], []>} : vector<8x32xf32>, vector<32x128xf32>, vector<8x128xf32> -> vector<8x128xf32>
    %39 = arith.addf %37, %38 : vector<8x128xf32>
    %40 = vector.extract_strided_slice %39 {offsets = [0, 0], sizes = [8, 96], strides = [1, 1]} : vector<8x128xf32> to vector<8x96xf32>
    %41 = arith.negf %40 : vector<8x96xf32>
    %42 = math.exp %41 : vector<8x96xf32>
    %cst_18 = arith.constant 1.000000e+00 : f32
    %43 = vector.broadcast %cst_18 : f32 to vector<8x96xf32>
    %44 = arith.addf %43, %42 : vector<8x96xf32>
    %45 = arith.divf %43, %44 : vector<8x96xf32>
    %46 = vector.extract_strided_slice %45 {offsets = [0, 0], sizes = [8, 32], strides = [1, 1]} : vector<8x96xf32> to vector<8x32xf32>
    %47 = vector.extract_strided_slice %45 {offsets = [0, 32], sizes = [8, 32], strides = [1, 1]} : vector<8x96xf32> to vector<8x32xf32>
    %48 = vector.extract_strided_slice %45 {offsets = [0, 64], sizes = [8, 32], strides = [1, 1]} : vector<8x96xf32> to vector<8x32xf32>
    %49 = vector.extract_strided_slice %39 {offsets = [0, 96], sizes = [8, 32], strides = [1, 1]} : vector<8x128xf32> to vector<8x32xf32>
    %50 = math.tanh %49 : vector<8x32xf32>
    %51 = arith.mulf %47, %29 : vector<8x32xf32>
    %52 = arith.mulf %46, %50 : vector<8x32xf32>
    %53 = arith.addf %51, %52 : vector<8x32xf32>
    %54 = math.tanh %53 : vector<8x32xf32>
    %55 = arith.mulf %48, %54 : vector<8x32xf32>
    %56 = arith.index_cast %35 : i32 to index
    %c0_19 = arith.constant 0 : index
    %57 = vector.load %arg11[%56, %c0_19] : memref<16x32xf32, #tpu.memory_space<vmem>>, vector<8x32xf32>
    tpu.vector_store %arg11[%56, %c0_19], %55 {strides = array<i32>} : memref<16x32xf32, #tpu.memory_space<vmem>>, vector<8x32xf32>,
    %c2_i32 = arith.constant 2 : i32
    %c0_20 = arith.constant 0 : index
    %c0_21 = arith.constant 0 : index
    %58 = vector.load %arg11[%c0_20, %c0_21] : memref<16x32xf32, #tpu.memory_space<vmem>>, vector<16x32xf32>
    %c0_22 = arith.constant 0 : index
    %c0_23 = arith.constant 0 : index
    %59 = vector.load %arg5[%c0_22, %c0_23] : memref<32x128xf32, #tpu.memory_space<vmem>>, vector<32x128xf32>
    %cst_24 = arith.constant dense<0.000000e+00> : vector<16x128xf32>
    %60 = tpu.matmul %58, %59, %cst_24 {dimension_numbers = #tpu.dot_dimension_numbers<[1], [0], [0], [1], [0, 0, 1, 1], [], []>} : vector<16x32xf32>, vector<32x128xf32>, vector<16x128xf32> -> vector<16x128xf32>
    %c0_25 = arith.constant 0 : index
    %c0_26 = arith.constant 0 : index
    %61 = vector.load %arg7[%c0_25, %c0_26] : memref<1x128xf32, #tpu.memory_space<vmem>>, vector<1x128xf32>
    %62 = vector.broadcast %61 : vector<1x128xf32> to vector<16x128xf32>
    %63 = arith.addf %60, %62 : vector<16x128xf32>
    %c0_27 = arith.constant 0 : index
    %c0_28 = arith.constant 0 : index
    %64 = vector.load %arg12[%c0_27, %c0_28] : memref<16x128xf32, #tpu.memory_space<vmem>>, vector<16x128xf32>
    tpu.vector_store %arg12[%c0_27, %c0_28], %63 {strides = array<i32>} : memref<16x128xf32, #tpu.memory_space<vmem>>, vector<16x128xf32>,
    %c0_29 = arith.constant 0 : index
    %c0_30 = arith.constant 0 : index
    %65 = vector.load %arg6[%c0_29, %c0_30] : memref<32x128xf32, #tpu.memory_space<vmem>>, vector<32x128xf32>
    %cst_31 = arith.constant 0.000000e+00 : f32
    %66 = vector.broadcast %cst_31 : f32 to vector<8x32xf32>
    %cst_32 = arith.constant 0.000000e+00 : f32
    %67 = vector.broadcast %cst_32 : f32 to vector<8x32xf32>
    %c0_i32_33 = arith.constant 0 : i32
    %c8_i32_34 = arith.constant 8 : i32
    %68 = arith.muli %c0_i32_33, %c8_i32_34 : i32
    %69 = tpu.assume_multiple %68, 8 : i32
    %70 = arith.index_cast %69 : i32 to index
    %c0_35 = arith.constant 0 : index
    %71 = vector.load %arg12[%70, %c0_35] : memref<16x128xf32, #tpu.memory_space<vmem>>, vector<8x128xf32>
    %cst_36 = arith.constant dense<0.000000e+00> : vector<8x128xf32>
    %72 = tpu.matmul %66, %65, %cst_36 {dimension_numbers = #tpu.dot_dimension_numbers<[1], [0], [0], [1], [0, 0, 1, 1], [], []>} : vector<8x32xf32>, vector<32x128xf32>, vector<8x128xf32> -> vector<8x128xf32>
    %73 = arith.addf %71, %72 : vector<8x128xf32>
    %74 = vector.extract_strided_slice %73 {offsets = [0, 0], sizes = [8, 96], strides = [1, 1]} : vector<8x128xf32> to vector<8x96xf32>
    %75 = arith.negf %74 : vector<8x96xf32>
    %76 = math.exp %75 : vector<8x96xf32>
    %cst_37 = arith.constant 1.000000e+00 : f32
    %77 = vector.broadcast %cst_37 : f32 to vector<8x96xf32>
    %78 = arith.addf %77, %76 : vector<8x96xf32>
    %79 = arith.divf %77, %78 : vector<8x96xf32>
    %80 = vector.extract_strided_slice %79 {offsets = [0, 0], sizes = [8, 32], strides = [1, 1]} : vector<8x96xf32> to vector<8x32xf32>
    %81 = vector.extract_strided_slice %79 {offsets = [0, 32], sizes = [8, 32], strides = [1, 1]} : vector<8x96xf32> to vector<8x32xf32>
    %82 = vector.extract_strided_slice %79 {offsets = [0, 64], sizes = [8, 32], strides = [1, 1]} : vector<8x96xf32> to vector<8x32xf32>
    %83 = vector.extract_strided_slice %73 {offsets = [0, 96], sizes = [8, 32], strides = [1, 1]} : vector<8x128xf32> to vector<8x32xf32>
    %84 = math.tanh %83 : vector<8x32xf32>
    %85 = arith.mulf %81, %67 : vector<8x32xf32>
    %86 = arith.mulf %80, %84 : vector<8x32xf32>
    %87 = arith.addf %85, %86 : vector<8x32xf32>
    %88 = math.tanh %87 : vector<8x32xf32>
    %89 = arith.mulf %82, %88 : vector<8x32xf32>
    %c1_i32_38 = arith.constant 1 : i32
    %c8_i32_39 = arith.constant 8 : i32
    %90 = arith.muli %c1_i32_38, %c8_i32_39 : i32
    %91 = tpu.assume_multiple %90, 8 : i32
    %92 = arith.index_cast %91 : i32 to index
    %c0_40 = arith.constant 0 : index
    %93 = vector.load %arg12[%92, %c0_40] : memref<16x128xf32, #tpu.memory_space<vmem>>, vector<8x128xf32>
    %cst_41 = arith.constant dense<0.000000e+00> : vector<8x128xf32>
    %94 = tpu.matmul %89, %65, %cst_41 {dimension_numbers = #tpu.dot_dimension_numbers<[1], [0], [0], [1], [0, 0, 1, 1], [], []>} : vector<8x32xf32>, vector<32x128xf32>, vector<8x128xf32> -> vector<8x128xf32>
    %95 = arith.addf %93, %94 : vector<8x128xf32>
    %96 = vector.extract_strided_slice %95 {offsets = [0, 0], sizes = [8, 96], strides = [1, 1]} : vector<8x128xf32> to vector<8x96xf32>
    %97 = arith.negf %96 : vector<8x96xf32>
    %98 = math.exp %97 : vector<8x96xf32>
    %cst_42 = arith.constant 1.000000e+00 : f32
    %99 = vector.broadcast %cst_42 : f32 to vector<8x96xf32>
    %100 = arith.addf %99, %98 : vector<8x96xf32>
    %101 = arith.divf %99, %100 : vector<8x96xf32>
    %102 = vector.extract_strided_slice %101 {offsets = [0, 0], sizes = [8, 32], strides = [1, 1]} : vector<8x96xf32> to vector<8x32xf32>
    %103 = vector.extract_strided_slice %101 {offsets = [0, 32], sizes = [8, 32], strides = [1, 1]} : vector<8x96xf32> to vector<8x32xf32>
    %104 = vector.extract_strided_slice %101 {offsets = [0, 64], sizes = [8, 32], strides = [1, 1]} : vector<8x96xf32> to vector<8x32xf32>
    %105 = vector.extract_strided_slice %95 {offsets = [0, 96], sizes = [8, 32], strides = [1, 1]} : vector<8x128xf32> to vector<8x32xf32>
    %106 = math.tanh %105 : vector<8x32xf32>
    %107 = arith.mulf %103, %87 : vector<8x32xf32>
    %108 = arith.mulf %102, %106 : vector<8x32xf32>
    %109 = arith.addf %107, %108 : vector<8x32xf32>
    %110 = math.tanh %109 : vector<8x32xf32>
    %111 = arith.mulf %104, %110 : vector<8x32xf32>
    %c2_i32_43 = arith.constant 2 : i32
    %112 = vector.extract_strided_slice %111 {offsets = [6, 0], sizes = [2, 32], strides = [1, 1]} : vector<8x32xf32> to vector<2x32xf32>
    %c0_44 = arith.constant 0 : index
    %c0_45 = arith.constant 0 : index
    %113 = vector.load %arg8[%c0_44, %c0_45] : memref<1x32xf32, #tpu.memory_space<vmem>>, vector<1x32xf32>
    %114 = vector.broadcast %113 : vector<1x32xf32> to vector<2x32xf32>
    %115 = arith.mulf %112, %114 : vector<2x32xf32>
    %cst_46 = arith.constant dense<0.000000e+00> : vector<2xf32>
    %116 = vector.multi_reduction <add>, %115, %cst_46 [1] : vector<2x32xf32> to vector<2xf32>
    %117 = vector.shape_cast %116 : vector<2xf32> to vector<1x2xf32>
    %c0_47 = arith.constant 0 : index
    %c0_48 = arith.constant 0 : index
    %118 = vector.load %arg9[%c0_47, %c0_48] : memref<1x1xf32, #tpu.memory_space<vmem>>, vector<1x1xf32>
    %119 = vector.broadcast %118 : vector<1x1xf32> to vector<1x2xf32>
    %120 = arith.addf %117, %119 : vector<1x2xf32>
    %c0_49 = arith.constant 0 : index
    %c0_50 = arith.constant 0 : index
    %121 = vector.load %arg10[%c0_49, %c0_50] : memref<1x2xf32, #tpu.memory_space<vmem>>, vector<1x2xf32>
    tpu.vector_store %arg10[%c0_49, %c0_50], %120 {strides = array<i32>} : memref<1x2xf32, #tpu.memory_space<vmem>>, vector<1x2xf32>,
    return
  }
  func.func @transform_0(%arg0: i32) -> (i32, i32) {
    %c0_i32 = arith.constant 0 : i32
    %c0_i32_0 = arith.constant 0 : i32
    %c0_i32_1 = arith.constant 0 : i32
    return %c0_i32, %c0_i32_0 : i32, i32
  }
  func.func @transform_1(%arg0: i32) -> (i32, i32) {
    %c0_i32 = arith.constant 0 : i32
    %c0_i32_0 = arith.constant 0 : i32
    %c0_i32_1 = arith.constant 0 : i32
    return %c0_i32, %c0_i32_0 : i32, i32
  }
  func.func @transform_2(%arg0: i32) -> (i32, i32) {
    %c0_i32 = arith.constant 0 : i32
    %c0_i32_0 = arith.constant 0 : i32
    %c0_i32_1 = arith.constant 0 : i32
    return %c0_i32, %c0_i32_0 : i32, i32
  }
  func.func @transform_3(%arg0: i32) -> (i32, i32) {
    %c0_i32 = arith.constant 0 : i32
    %c0_i32_0 = arith.constant 0 : i32
    %c0_i32_1 = arith.constant 0 : i32
    return %c0_i32, %c0_i32_0 : i32, i32
  }
  func.func @transform_4(%arg0: i32) -> (i32, i32) {
    %c0_i32 = arith.constant 0 : i32
    %c0_i32_0 = arith.constant 0 : i32
    %c0_i32_1 = arith.constant 0 : i32
    return %c0_i32, %c0_i32_0 : i32, i32
  }
  func.func @transform_5(%arg0: i32) -> (i32, i32) {
    %c0_i32 = arith.constant 0 : i32
    %c0_i32_0 = arith.constant 0 : i32
    %c0_i32_1 = arith.constant 0 : i32
    return %c0_i32, %c0_i32_0 : i32, i32
  }
  func.func @transform_6(%arg0: i32) -> (i32, i32) {
    %c0_i32 = arith.constant 0 : i32
    %c0_i32_0 = arith.constant 0 : i32
    %c0_i32_1 = arith.constant 0 : i32
    return %c0_i32, %c0_i32_0 : i32, i32
  }
  func.func @transform_7(%arg0: i32) -> (i32, i32) {
    %c0_i32 = arith.constant 0 : i32
    %c0_i32_0 = arith.constant 0 : i32
    %c0_i32_1 = arith.constant 0 : i32
    return %c0_i32, %c0_i32_0 : i32, i32
  }
  func.func @transform_8(%arg0: i32) -> (i32, i32) {
    %c0_i32 = arith.constant 0 : i32
    %c0_i32_0 = arith.constant 0 : i32
    %c0_i32_1 = arith.constant 0 : i32
    return %c0_i32, %c0_i32_0 : i32, i32
  }
  func.func @transform_9(%arg0: i32) -> (i32, i32) {
    %c0_i32 = arith.constant 0 : i32
    %c0_i32_0 = arith.constant 0 : i32
    %c0_i32_1 = arith.constant 0 : i32
    return %c0_i32, %c0_i32_0 : i32, i32
  }
}

</mosaic_0001>

<bundles_post_ra>
// kernel: tpu_custom_call.1
= control target key start
LH: loop header
LB: loop body
LE: loop exit
PB: predicated region body
PF: predicated region fallthrough
CT: control target
= control target key end

     0   :  { %s1150_s0 = inlined_call_operand.vmem [shape: f32[16,4], index: 0, kind: input, shape index: {}]   ;;  %s1151_s1 = inlined_call_operand.vmem [shape: f32[4,128], index: 1, kind: input, shape index: {}]   ;;  %s1152_s2 = inlined_call_operand.hbm [shape: f32[32,128], index: 2, kind: input, shape index: {}]   ;;  %s1153_s3 = inlined_call_operand.vmem [shape: f32[1,128], index: 3, kind: input, shape index: {}]   ;;  %s1154_s4 = inlined_call_operand.vmem [shape: f32[32,128], index: 4, kind: input, shape index: {}]   ;;  %s1155_s5 = inlined_call_operand.hbm [shape: f32[32,128], index: 5, kind: input, shape index: {}]   ;;  %s1156_s6 = inlined_call_operand.vmem [shape: f32[1,128], index: 6, kind: input, shape index: {}]   ;;  %s1157_s7 = inlined_call_operand.vmem [shape: f32[1,32], index: 7, kind: input, shape index: {}]   ;;  %s1158_s8 = inlined_call_operand.<no memory space> [shape: f32[1,1], index: 8, kind: input, shape index: {}]   ;;  %s1159_s9 = inlined_call_operand.hbm [shape: f32[1,2], index: 9, kind: output, shape index: {}]  }
   0x1   :  { %v14_v0 = vstv %s1158_s8 }
   0x2   :  { %15 = vst [vmem:[#allocation4] sm:$0x1] %v14_v0 }
   0x3   :  { %16 = vsyncpa [#allocation6], 0 }
   0x4   :  { %17 = vsyncpa [#allocation9], 0 }
   0x5   :  { %18 = vsyncpa [#allocation7], 0  ;;  %s979_s11 = smov [#allocation5]   ;;  %s907_s15 = scalar_lea.hbm %s1152_s2, 512 }
   0x6   :  { %s28_s12 = sshll.u32 %s979_s11, 4  ;;  %p908_p0 = scmp.ne.s32.totalorder %s1152_s2, %s907_s15  ;;  %s29_s12 = int_to_ptr.vmem [resolvable:$true] %s28_s12 }
   0x7   :  { %p911_p1 = scmp.lt.u32.totalorder %s907_s15, %s1152_s2 }
   0x9   :  { %p913_p2 = pnand %p911_p1, %p908_p0 }
   0xb   :  { %916 = shalt.err (!%p913_p2)
}
   0xc   :  { %s917_s8 = scalar_lea.vmem %s29_s12, 512  ;;  %p922_p4 = scmp.lt.s32.totalorder %s29_s12, %s29_s12 }
   0xd   :  { %p918_p3 = scmp.ne.s32.totalorder %s29_s12, %s917_s8  ;;  %p923_p5 = scmp.lt.s32.totalorder %s917_s8, %s917_s8 }
   0xf   :  { %p924_p6 = por %p923_p5, %p922_p4 }
  0x11   :  { %p925_p7 = pnand %p924_p6, %p918_p3 }
  0x13   :  { %928 = shalt.err (!%p925_p7)
}
  0x14   :  { %s980_s20 = smov 128   ;;  %s981_s21 = smov 8  }
  0x15   :  { %34 = dma.hbm_to_vmem [thread:$0]  %s1152_s2, 512, %s29_s12, [#allocation6], %s980_s20, %s980_s20, %s981_s21  }
  0x16   :  { %s982_s24 = smov [#allocation8]   ;;  %s929_s28 = scalar_lea.hbm %s1155_s5, 512 }
  0x17   :  { %s44_s25 = sshll.u32 %s982_s24, 4  ;;  %p930_p8 = scmp.ne.s32.totalorder %s1155_s5, %s929_s28  ;;  %s45_s25 = int_to_ptr.vmem [resolvable:$true] %s44_s25 }
  0x18   :  { %p933_p9 = scmp.lt.u32.totalorder %s929_s28, %s1155_s5 }
  0x1a   :  { %p935_p10 = pnand %p933_p9, %p930_p8 }
  0x1c   :  { %938 = shalt.err (!%p935_p10)
}
  0x1d   :  { %s939_s13 = scalar_lea.vmem %s45_s25, 512  ;;  %p944_p12 = scmp.lt.s32.totalorder %s45_s25, %s45_s25 }
  0x1e   :  { %p940_p11 = scmp.ne.s32.totalorder %s45_s25, %s939_s13  ;;  %p945_p13 = scmp.lt.s32.totalorder %s939_s13, %s939_s13 }
  0x20   :  { %p946_p0 = por %p945_p13, %p944_p12 }
  0x22   :  { %p947_p1 = pnand %p946_p0, %p940_p11 }
  0x24   :  { %950 = shalt.err (!%p947_p1)
}
  0x25   :  { %50 = dma.hbm_to_vmem [thread:$0]  %s1155_s5, 512, %s45_s25, [#allocation9], %s980_s20, %s980_s20, %s981_s21  }
  0x26   :  { %973 = dma.done.wait [#allocation6], 512  }
  0x27   :  { %974 = vsyncadd [#allocation6], 4294966784 }
  0x28   :  { %975 = dma.done.wait [#allocation9], 512  }
  0x29   :  { %976 = vsyncadd [#allocation9], 4294966784  ;;  %v983_v1 = vmov 0.0|0.0   ;;  %vm984_vm0 = vmmov 0   ;;  %v985_v2 = vmov 0.0   ;;  %vm80_vm1 = vcmask 1043456  }
  0x2a   :  { %831 = vmatprep.subr.bf16.mxu1 %v983_v1  ;;  %784 = vmatprep.mubr.msk.f32.mxu1 %vm984_vm0, %v985_v2  ;;  %vm73_vm2 = vcmask 31744   ;;  %v161_v3 = vld [vmem:[#allocation5] sm:$0xff]  ;;  %v162_v4 = vld [vmem:[#allocation5 + $0x8] sm:$0xff]  ;;  %v64_v8 = vld [vmem:[%s1150_s0 + $0x8] sm:$0xff]  ;;  %s986_s19 = smov 32   ;;  %vm166_vm3 = vcmask 261120  }
  0x2b   :  { %v65_v5 = vld [vmem:[%s1151_s1] sm:$0xf]  ;;  %v832_v6 = vpack.c.bf16 %v162_v4, %v161_v3  ;;  %v164_v10 = vld [vmem:[#allocation5 + $0x18] sm:$0xff]  ;;  %v471_v52 = vld [vmem:[#allocation8] sm:$0xff]  ;;  %vm686_vm4 = vcmask 261126   ;;  %vm710_vm5 = vcmask 14342  }
  0x2c   :  { %771 = vmatprep.subr.msk.mxu0 %vm80_vm1, %v65_v5  ;;  %v63_v7 = vld [vmem:[%s1150_s0] sm:$0xff]  ;;  %v378_v50 = vld [vmem:[%s1154_s4 + $0x8] sm:$0xff]  ;;  %v379_v54 = vld [vmem:[%s1154_s4 + $0x10] sm:$0xff] }
  0x2d   :  { %v163_v9 = vld [vmem:[#allocation5 + $0x10] sm:$0xff]  ;;  %772 = vmatpush3.msk.msra.mxu0 %vm80_vm1, %v65_v5  ;;  %773 = vmatprep.mubr.msk.f32.mxu0 %vm73_vm2, %v63_v7  ;;  %v728_v12 = vld [vmem:[%s1153_s3] ss:$0 sm:$0xff]  ;;  %s987_s3 = smov 64   ;;  %v380_v56 = vld [vmem:[%s1154_s4 + $0x18] sm:$0xff] }
  0x2e   :  { %833 = vmatpush3.bf16.msra.mxu1 %v832_v6  ;;  %774 = vmatmul.mubr.msk.f32.vlgmr.msra.gmra.mrb[0].mxu0 %vm73_vm2, %v64_v8  ;;  %v835_v11 = vpack.c.bf16 %v164_v10, %v163_v9  ;;  %v377_v49 = vld [vmem:[%s1154_s4] sm:$0xff]  ;;  %v474_v58 = vld [vmem:[#allocation8 + $0x18] sm:$0xff]  ;;  %v847_v59 = vpack.c.bf16 %v380_v56, %v379_v54 }
  0x2f   :  { %834 = vmatprep.subr.bf16.mxu1 %v983_v1  ;;  %837 = vmatprep.subr.bf16.mxu0 %v983_v1  ;;  %v843_v51 = vpack.c.bf16 %v378_v50, %v377_v49  ;;  %v472_v53 = vld [vmem:[#allocation8 + $0x8] sm:$0xff]  ;;  %v473_v57 = vld [vmem:[#allocation8 + $0x10] sm:$0xff] }
  0x30   :  { %839 = vmatpush3.bf16.msra.mxu0 %v832_v6  ;;  %795 = vmatprep.mubr.msk.f32.mxu0 %vm984_vm0, %v985_v2  ;;  %v852_v55 = vpack.c.bf16 %v472_v53, %v471_v52  ;;  %v855_v60 = vpack.c.bf16 %v474_v58, %v473_v57  ;;  %v735_v5 = vld [vmem:[%s1156_s6] ss:$0 sm:$0xff] }
  0x31   :  { %840 = vmatprep.subr.bf16.mxu0 %v983_v1 }
  0x32   :  { %836 = vmatpush3.bf16.msra.mxu1 %v835_v11 }
  0x33   :  { %844 = vmatprep.subr.bf16.mxu1 %v843_v51 }
  0x34   :  { %842 = vmatpush3.bf16.msra.mxu0 %v835_v11 }
  0x35   :  { %785 = vmatmul.mubr.f32.vlgmr.msra.gmra.mrb[0].mxu1 %v985_v2  ;;  %851 = vmatprep.subr.bf16.mxu0 %v983_v1 }
  0x36   :  { %846 = vmatpush3.bf16.msra.mxu1 %v843_v51 }
  0x37   :  { %848 = vmatprep.subr.bf16.mxu1 %v847_v59 }
  0x3a   :  { %850 = vmatpush3.bf16.msra.mxu1 %v847_v59 }
  0x3b   :  { %857 = vmatprep.subr.bf16.mxu1 %v983_v1 }
 0x101   :  { %v775_v13 = vpop.f32.mrb[0].mxu0 }
 0x102   :  { %v156_v14 = vadd.f32 %v775_v13, %v728_v12  ;;  %v150_v15 = vpop.f32.mrb[1].mxu0 }
 0x103   :  { %v151_v16 = vadd.f32 %v728_v12, %v150_v15 }
 0x108   :  { %v236_v17 = vpop.f32.mrb[0].mxu1 }
 0x109   :  { %v240_v18 = vadd.f32 %v236_v17, %v151_v16  ;;  %v786_v19 = vpop.f32.mrb[1].mxu1 }
 0x10b   :  { %875 = vtanh.f32 %v240_v18  ;;  %v732_v21 = vmul.f32 -1.442695, %v240_v18 }
 0x10d   :  { %877 = vpow2.f32 %v732_v21 }
 0x115   :  { %v876_v20 = vpop.eup %875 }
 0x116   :  { %250 = vrot.lane.b32.xlu0 %v876_v20, %s986_s19 }
 0x117   :  { %v878_v22 = vpop.eup %877 }
 0x118   :  { %v244_v23 = vadd.f32 1.0, %v878_v22 }
 0x11a   :  { %879 = vrcp.f32 %v244_v23 }
 0x124   :  { %v880_v24 = vpop.eup %879 }
 0x125   :  { %v248_v27 = vmul.f32 0.0, %v880_v24 }
 0x188   :  { %v251_v25 = vpop.permute.xlu0 %250 }
 0x189   :  { %v253_v26 = vmul.f32 %v880_v24, %v251_v25 }
 0x18b   :  { %255 = vrot.lane.b32.xlu0 %v253_v26, %s986_s19 }
 0x1fd   :  { %v256_v28 = vpop.permute.xlu0 %255 }
 0x1fe   :  { %v258_v29 = vadd.f32 %v256_v28, %v248_v27 }
 0x200   :  { %881 = vtanh.f32 %v258_v29 }
 0x20a   :  { %v882_v30 = vpop.eup %881 }
 0x20b   :  { %261 = vrot.lane.b32.xlu1 %v882_v30, %s986_s19 }
 0x27d   :  { %v262_v31 = vpop.permute.xlu1 %261 }
 0x27e   :  { %v264_v32 = vmul.f32 %v880_v24, %v262_v31 }
 0x280   :  { %266 = vrot.lane.b32.xlu1 %v264_v32, %s987_s3 }
 0x2f2   :  { %v267_v33 = vpop.permute.xlu1 %266 }
 0x2f3   :  { %269 = vst.msk [vmem:[#allocation2] sm:$0xff] %vm166_vm3, %v267_v33  ;;  %796 = vmatmul.mubr.msk.f32.vlgmr.msra.gmra.mrb[2].mxu0 %vm166_vm3, %v267_v33  ;;  %v741_v33 = vld [vmem:[%s1157_s7] ss:$0 sm:$0xff]  ;;  %s989_s7 = smov [#allocation10]  }
 0x2f4   :  { %817 = vmatprep.mubr.msk.f32.mxu0 %vm984_vm0, %v985_v2  ;;  %853 = vmatpush3.bf16.msra.mxu0 %v852_v55  ;;  %s718_s29 = sshll.u32 %s989_s7, 4  ;;  %s719_s29 = int_to_ptr.vmem [resolvable:$true] %s718_s29 }
 0x2f5   :  { %854 = vmatprep.subr.bf16.mxu0 %v983_v1  ;;  %s951_s30 = scalar_lea.vmem %s719_s29, 16  ;;  %s955_s10 = scalar_lea.vmem %s719_s29, 32 }
 0x2f6   :  { %p952_p2 = scmp.ne.s32.totalorder %s719_s29, %s951_s30  ;;  %p956_p3 = scmp.lt.s32.totalorder %s719_s29, %s719_s29 }
 0x2f7   :  { %p957_p4 = scmp.lt.s32.totalorder %s955_s10, %s951_s30 }
 0x2f8   :  { %856 = vmatpush3.bf16.msra.mxu0 %v855_v60 }
 0x2f9   :  { %p958_p5 = por %p957_p4, %p956_p3 }
 0x2fa   :  { %v375_v34 = vld [vmem:[#allocation2] sm:$0xff] }
 0x2fb   :  { %806 = vmatprep.mubr.msk.f32.mxu1 %vm166_vm3, %v375_v34  ;;  %818 = vmatmul.mubr.f32.vlgmr.msra.gmra.mrb[4].mxu0 %v985_v2  ;;  %p959_p6 = pnand %p958_p5, %p952_p2 }
 0x3c6   :  { %v340_v35 = vpop.f32.mrb[2].mxu0 }
 0x3c7   :  { %v344_v36 = vadd.f32 %v340_v35, %v156_v14  ;;  %v797_v37 = vpop.f32.mrb[3].mxu0 }
 0x3c9   :  { %883 = vtanh.f32 %v344_v36  ;;  %v734_v39 = vmul.f32 -1.442695, %v344_v36 }
 0x3cb   :  { %885 = vpow2.f32 %v734_v39 }
 0x3ce   :  { %v542_v3 = vpop.f32.mrb[4].mxu0 }
 0x3cf   :  { %v819_v4 = vpop.f32.mrb[5].mxu0 }
 0x3d3   :  { %v884_v38 = vpop.eup %883 }
 0x3d4   :  { %354 = vrot.lane.b32.xlu0 %v884_v38, %s986_s19  ;;  %v988_v38 = vmov 0  }
 0x3d5   :  { %v886_v40 = vpop.eup %885  ;;  %874 = vset.pattern.permute.xlu0 %v988_v38 }
 0x3d6   :  { %v348_v41 = vadd.f32 1.0, %v886_v40 }
 0x3d8   :  { %887 = vrcp.f32 %v348_v41 }
 0x3e2   :  { %v888_v42 = vpop.eup %887 }
 0x3e3   :  { %v352_v45 = vmul.f32 %v888_v42, %v258_v29 }
 0x446   :  { %v355_v43 = vpop.permute.xlu0 %354 }
 0x447   :  { %v357_v44 = vmul.f32 %v888_v42, %v355_v43  ;;  %v690_v43 = vld [vmem:[#allocation4] sm:$0x1] }
 0x449   :  { %359 = vrot.lane.b32.xlu1 %v357_v44, %s986_s19 }
 0x4bb   :  { %v360_v46 = vpop.permute.xlu1 %359 }
 0x4bc   :  { %v362_v47 = vadd.f32 %v360_v46, %v352_v45  ;;  %v696_v46 = vlaneseq }
 0x4be   :  { %889 = vtanh.f32 %v362_v47  ;;  %v697_v47 = vshrl.u32 %v696_v46, 7 }
 0x4c0   :  { %v698_v49 = vsub.s32 0, %v697_v47 }
 0x4c8   :  { %v890_v48 = vpop.eup %889 }
 0x4c9   :  { %365 = vrot.lane.b32.xlu0 %v890_v48, %s986_s19  ;;  %v703_v48 = vand.u32 127, %v696_v46 }
 0x4cb   :  { %v704_v51 = vadd.s32 6, %v703_v48 }
 0x4cd   :  { %v707_v53 = vsub.s32 %v704_v51, %v697_v47 }
 0x53b   :  { %v366_v61 = vpop.permute.xlu0 %365 }
 0x53c   :  { %v368_v62 = vmul.f32 %v888_v42, %v366_v61 }
 0x53e   :  { %370 = vrot.lane.b32.xlu1 %v368_v62, %s987_s3 }
 0x5b0   :  { %v371_v63 = vpop.permute.xlu1 %370 }
 0x5b1   :  { %374 = vst.msk [vmem:[#allocation2 + $0x8] sm:$0xff] %vm166_vm3, %v371_v63 }
 0x5b8   :  { %v376_v0 = vld [vmem:[#allocation2 + $0x8] sm:$0xff] }
 0x5b9   :  { %807 = vmatmul.mubr.msk.f32.vlgmr.msra.gmra.mrb[2].mxu1 %vm166_vm3, %v376_v0 }
 0x5ba   :  { %859 = vmatpush3.bf16.msra.mxu1 %v852_v55  ;;  %828 = vmatprep.mubr.msk.f32.mxu1 %vm984_vm0, %v985_v2 }
 0x5bb   :  { %860 = vmatprep.subr.bf16.mxu1 %v983_v1 }
 0x5be   :  { %862 = vmatpush3.bf16.msra.mxu1 %v855_v60 }
 0x68c   :  { %v808_v6 = vpop.f32.mrb[2].mxu1 }
 0x68d   :  { %v466_v7 = vadd.f32 %v808_v6, %v735_v5  ;;  %v460_v8 = vpop.f32.mrb[3].mxu1 }
 0x68e   :  { %v461_v9 = vadd.f32 %v735_v5, %v460_v8 }
 0x690   :  { %v546_v10 = vadd.f32 %v542_v3, %v461_v9 }
 0x692   :  { %891 = vtanh.f32 %v546_v10  ;;  %v738_v12 = vmul.f32 -1.442695, %v546_v10 }
 0x694   :  { %893 = vpow2.f32 %v738_v12 }
 0x69c   :  { %v892_v11 = vpop.eup %891 }
 0x69d   :  { %556 = vrot.lane.b32.xlu0 %v892_v11, %s986_s19 }
 0x69e   :  { %v894_v2 = vpop.eup %893 }
 0x69f   :  { %v550_v1 = vadd.f32 1.0, %v894_v2 }
 0x6a1   :  { %895 = vrcp.f32 %v550_v1 }
 0x6ab   :  { %v896_v13 = vpop.eup %895 }
 0x6ac   :  { %v554_v16 = vmul.f32 0.0, %v896_v13 }
 0x70f   :  { %v557_v14 = vpop.permute.xlu0 %556 }
 0x710   :  { %v559_v15 = vmul.f32 %v896_v13, %v557_v14 }
 0x712   :  { %561 = vrot.lane.b32.xlu1 %v559_v15, %s986_s19 }
 0x784   :  { %v562_v17 = vpop.permute.xlu1 %561 }
 0x785   :  { %v564_v18 = vadd.f32 %v562_v17, %v554_v16 }
 0x787   :  { %897 = vtanh.f32 %v564_v18 }
 0x791   :  { %v898_v19 = vpop.eup %897 }
 0x792   :  { %567 = vrot.lane.b32.xlu0 %v898_v19, %s986_s19 }
 0x804   :  { %v568_v20 = vpop.permute.xlu0 %567 }
 0x805   :  { %v570_v21 = vmul.f32 %v896_v13, %v568_v20 }
 0x807   :  { %573 = vrot.lane.b32.xlu1 %v570_v21, %s987_s3 }
 0x879   :  { %v574_v22 = vpop.permute.xlu1 %573 }
 0x87a   :  { %829 = vmatmul.mubr.msk.f32.vlgmr.msra.gmra.mrb[4].mxu1 %vm166_vm3, %v574_v22 }
 0x94d   :  { %v643_v23 = vpop.f32.mrb[4].mxu1 }
 0x94e   :  { %v647_v24 = vadd.f32 %v643_v23, %v466_v7  ;;  %v830_v25 = vpop.f32.mrb[5].mxu1 }
 0x950   :  { %899 = vtanh.f32 %v647_v24  ;;  %v740_v27 = vmul.f32 -1.442695, %v647_v24 }
 0x952   :  { %901 = vpow2.f32 %v740_v27 }
 0x95a   :  { %v900_v26 = vpop.eup %899 }
 0x95b   :  { %657 = vrot.lane.b32.xlu0 %v900_v26, %s986_s19 }
 0x95c   :  { %v902_v28 = vpop.eup %901 }
 0x95d   :  { %v651_v29 = vadd.f32 1.0, %v902_v28 }
 0x95f   :  { %903 = vrcp.f32 %v651_v29 }
 0x969   :  { %v904_v30 = vpop.eup %903 }
 0x96a   :  { %v655_v34 = vmul.f32 %v904_v30, %v564_v18 }
 0x9cd   :  { %v658_v31 = vpop.permute.xlu0 %657 }
 0x9ce   :  { %v660_v32 = vmul.f32 %v904_v30, %v658_v31 }
 0x9d0   :  { %662 = vrot.lane.b32.xlu1 %v660_v32, %s986_s19 }
 0x9d4   :  { %678 = vrot.lane.b32.xlu1 %v741_v33, %s987_s3 }
 0xa42   :  { %v663_v35 = vpop.permute.xlu1 %662 }
 0xa43   :  { %v665_v36 = vadd.f32 %v663_v35, %v655_v34 }
 0xa45   :  { %905 = vtanh.f32 %v665_v36 }
 0xa46   :  { %v679_v40 = vpop.permute.xlu1 %678 }
 0xa4f   :  { %v906_v37 = vpop.eup %905 }
 0xa50   :  { %668 = vrot.lane.b32.xlu0 %v906_v37, %s986_s19 }
 0xac2   :  { %v669_v39 = vpop.permute.xlu0 %668 }
 0xac3   :  { %v671_v41 = vmul.f32 %v904_v30, %v669_v39 }
 0xac5   :  { %v681_v42 = vmul.f32 %v679_v40, %v671_v41 }
 0xac7   :  { %683 = vrot.lane.b32.xlu0 %v681_v42, %s987_s3 }
 0xacb   :  { %693 = vperm.xlu0 %874, %v690_v43  }
 0xb39   :  { %v684_v44 = vpop.permute.xlu0 %683 }
 0xb3a   :  { %v687_v45 = vsel %vm686_vm4, %v684_v44, 0.0 }
 0xb3b   :  { %688 = vadd.xlane.f32.xlu1 %v687_v45 }
 0xb4a   :  { %v694_v50 = vpop.permute.xlu0 %693 }
 0xb4b   :  { %v699_v52 = vrot.slane %v694_v50, %v698_v49 }
 0xbc8   :  { %v689_v54 = vpop.xlane.xlu1 %688 }
 0xbc9   :  { %v700_v55 = vadd.f32 %v699_v52, %v689_v54 }
 0xbcb   :  { %v708_v56 = vrot.slane %v700_v55, %v707_v53 }
 0xbcd   :  { %711 = vst.msk [vmem:[#allocation10 - $0x6] sm:$0x40] %vm710_vm5, %v708_v56 }
 0xbce   :  { %962 = shalt.err (!%p959_p6)
}
 0xbcf   :  { %s963_s2 = scalar_lea.hbm %s1159_s9, 16 }
 0xbd0   :  { %p964_p7 = scmp.ne.s32.totalorder %s1159_s9, %s963_s2  ;;  %p967_p8 = scmp.lt.u32.totalorder %s963_s2, %s1159_s9 }
 0xbd2   :  { %p969_p9 = pnand %p967_p8, %p964_p7 }
 0xbd4   :  { %972 = shalt.err (!%p969_p9)
}
 0xbd5   :  { %721 = dma.vmem_to_hbm [thread:$0]  %s719_s29, 16, %s1159_s9, [#allocation7]  }
 0xbd6   :  { %977 = dma.done.wait [#allocation7], 16  }
 0xbd7   :  { %978 = vsyncadd [#allocation7], 4294967280 }
 0xbd8   :  { %725 = vsyncpa [#allocation6], 1 }
 0xbd9   :  { %726 = vsyncpa [#allocation9], 1 }
 0xbda   :  { %727 = vsyncpa [#allocation7], 1 }

</bundles_post_ra>
